<compile_context>
chip_gen: v6e
topology: v6e:2x2x1
jax: 0.10.0
libtpu: 0.0.40
codegen_flags: <defaults>
</compile_context>

<pallas_src>
import functools

import jax
import jax.numpy as jnp
from jax import lax
from jax.experimental import pallas as pl
from jax.experimental.pallas import tpu as pltpu


def _temporal_block_kernel(x_ref, w1d_ref, b1d_ref, w2_ref, b2_ref, o_ref, *,
                           K, dilation, Cout):
    """One batch element per grid step, (C, L) orientation (L on lanes).

    x_ref   : (1, Cin, pad + L)  causally left-padded input (compute dtype)
    w1d_ref : (2*Cout, K*Cin)    conv1 taps + 1x1 downsample (fused rows)
    b1d_ref : (2*Cout, 1)        [b1 ; bd], f32
    w2_ref  : (Cout, K*Cout)     conv2 taps
    b2_ref  : (Cout, 1)          f32
    o_ref   : (1, Cout, L)
    """
    pad = (K - 1) * dilation
    x_pad = x_ref[0]                                     # (Cin, pad + L)
    L = x_pad.shape[1] - pad

    # im2col for the dilated causal conv: tap k reads x[t - (K-1-k)*dilation],
    # which on the left-padded input is the *static* slice [:, k*d : k*d + L].
    xcol = jnp.concatenate(
        [x_pad[:, k * dilation:k * dilation + L] for k in range(K)], axis=0)  # (K*Cin, L)

    # conv1 + residual 1x1 downsample in a single MXU matmul (f32 accumulation).
    t1 = jnp.dot(w1d_ref[...], xcol,
                 preferred_element_type=jnp.float32) + b1d_ref[...]           # (2*Cout, L)
    h1 = jnp.maximum(t1[:Cout], 0.0)     # conv1 -> chomp -> relu -> dropout(identity)
    res = t1[Cout:]                      # downsample(x) residual branch

    # conv2: zero-headed staging of h1 (causal left pad), then one matmul.
    h1c = h1.astype(x_pad.dtype)
    if pad > 0:
        h1c = jnp.concatenate([jnp.zeros((Cout, pad), h1c.dtype), h1c], axis=1)
    h1col = jnp.concatenate(
        [h1c[:, k * dilation:k * dilation + L] for k in range(K)], axis=0)    # (K*Cout, L)
    h2 = jnp.maximum(
        jnp.dot(w2_ref[...], h1col, preferred_element_type=jnp.float32)
        + b2_ref[...], 0.0)              # conv2 -> chomp -> relu -> dropout(identity)

    o_ref[0] = jnp.maximum(h2 + res, 0.0).astype(o_ref.dtype)


def temporal_block_pallas(x_ncl, w1, b1, w2, b2, wd, bd, *,
                          kernel_size, dilation,
                          compute_dtype=jnp.bfloat16, out_dtype=jnp.float32):
    """x_ncl: (B, Cin, L) — PyTorch NCL layout (no transposes needed).

    w1: (Cout, Cin, K), w2: (Cout, Cout, K), wd: (Cout, Cin, 1) effective
    (weight-normed) conv weights; b1/b2/bd: (Cout,).
    For the n_inputs == n_outputs case (no downsample) pass
    wd = identity(Cout)[:, :, None] and bd = zeros(Cout).
    """
    B, Cin, L = x_ncl.shape
    Cout = w1.shape[0]
    K = kernel_size
    pad = (K - 1) * dilation

    # Weights in im2col layout: row-block k of the contraction axis is tap k.
    w1_mat = jnp.transpose(w1, (0, 2, 1)).reshape(Cout, K * Cin)
    w2_mat = jnp.transpose(w2, (0, 2, 1)).reshape(Cout, K * Cout)
    # Fuse the 1x1 downsample into the conv1 matmul: it only uses the
    # un-shifted tap (k = K-1); every other tap is zero.
    wd_ext = jnp.zeros((Cout, K * Cin), w1.dtype)
    wd_ext = wd_ext.at[:, (K - 1) * Cin:].set(wd[:, :, 0])
    w1d = jnp.concatenate([w1_mat, wd_ext], axis=0)            # (2*Cout, K*Cin)
    b1d = jnp.concatenate([b1, bd])[:, None].astype(jnp.float32)
    b2c = b2[:, None].astype(jnp.float32)

    # Causal left zero-pad once in the wrapper -> every tap is a static slice.
    x_pad = jnp.pad(x_ncl, ((0, 0), (0, 0), (pad, 0))).astype(compute_dtype)
    w1d = w1d.astype(compute_dtype)
    w2_mat = w2_mat.astype(compute_dtype)

    kernel = functools.partial(_temporal_block_kernel,
                               K=K, dilation=dilation, Cout=Cout)

    itemsize = jnp.dtype(compute_dtype).itemsize
    flops = 2 * B * L * (2 * Cout * K * Cin + Cout * K * Cout)
    bytes_accessed = (x_pad.size * itemsize + w1d.size * itemsize
                      + w2_mat.size * itemsize + b1d.size * 4 + b2c.size * 4
                      + B * Cout * L * jnp.dtype(out_dtype).itemsize)

    # TODO(synk): for very long sequences, tile L on a second "parallel" grid
    # axis with a 2*(K-1)*dilation input halo (keeps v7x's 2 TCs busy at B=1
    # and bounds VMEM on the 64 MiB parts).
    return pl.pallas_call(
        kernel,
        out_shape=jax.ShapeDtypeStruct((B, Cout, L), out_dtype),
        grid_spec=pltpu.PrefetchScalarGridSpec(
            num_scalar_prefetch=0,
            grid=(B,),
            in_specs=[
                pl.BlockSpec((1, Cin, pad + L), lambda b: (b, 0, 0)),
                pl.BlockSpec((2 * Cout, K * Cin), lambda b: (0, 0)),
                pl.BlockSpec((2 * Cout, 1), lambda b: (0, 0)),
                pl.BlockSpec((Cout, K * Cout), lambda b: (0, 0)),
                pl.BlockSpec((Cout, 1), lambda b: (0, 0)),
            ],
            out_specs=pl.BlockSpec((1, Cout, L), lambda b: (b, 0, 0)),
        ),
        compiler_params=pltpu.CompilerParams(
            dimension_semantics=("parallel",)),
        cost_estimate=pl.CostEstimate(flops=int(flops), transcendentals=0,
                                      bytes_accessed=int(bytes_accessed)),
    )(x_pad, w1d, b1d, w2_mat, b2c)


# ----------------------------------------------------------------------------
# Parameter setup (weight_norm reparameterization applied in plain-JAX glue)
# ----------------------------------------------------------------------------
def weight_norm_effective(v, g):
    # PyTorch weight_norm (dim=0): w = g * v / ||v||, norm over all dims but 0.
    norm = jnp.sqrt(jnp.sum(v * v, axis=(1, 2), keepdims=True))
    return g[:, None, None] * v / norm


def make_params(key, n_inputs, n_outputs, kernel_size):
    ks = jax.random.split(key, 6)
    v1 = 0.01 * jax.random.normal(ks[0], (n_outputs, n_inputs, kernel_size), jnp.float32)
    g1 = jnp.sqrt(jnp.sum(v1 * v1, axis=(1, 2)))       # weight_norm init: g = ||v||
    v2 = 0.01 * jax.random.normal(ks[1], (n_outputs, n_outputs, kernel_size), jnp.float32)
    g2 = jnp.sqrt(jnp.sum(v2 * v2, axis=(1, 2)))
    wd = 0.01 * jax.random.normal(ks[2], (n_outputs, n_inputs, 1), jnp.float32)
    b1 = 0.01 * jax.random.normal(ks[3], (n_outputs,), jnp.float32)
    b2 = 0.01 * jax.random.normal(ks[4], (n_outputs,), jnp.float32)
    bd = 0.01 * jax.random.normal(ks[5], (n_outputs,), jnp.float32)
    return weight_norm_effective(v1, g1), b1, weight_norm_effective(v2, g2), b2, wd, bd


def reference_forward(x_ncl, w1, b1, w2, b2, wd, bd, dilation, padding):
    """Pure-JAX reference in PyTorch NCL layout (lax.conv_general_dilated, f32)."""
    def conv_chomp(x, w, b):
        y = lax.conv_general_dilated(
            x, w, window_strides=(1,), padding=[(padding, padding)],
            rhs_dilation=(dilation,), dimension_numbers=("NCH", "OIH", "NCH"),
            precision=lax.Precision.HIGHEST)
        return y[:, :, :-padding] + b[None, :, None]
    h1 = jax.nn.relu(conv_chomp(x_ncl, w1, b1))
    h2 = jax.nn.relu(conv_chomp(h1, w2, b2))
    res = lax.conv_general_dilated(
        x_ncl, wd, window_strides=(1,), padding=[(0, 0)],
        dimension_numbers=("NCH", "OIH", "NCH"),
        precision=lax.Precision.HIGHEST) + bd[None, :, None]
    return jax.nn.relu(h2 + res)


if __name__ == "__main__":
    # TemporalBlock(n_inputs=8, n_outputs=16, kernel_size=3, stride=1,
    #               dilation=2, padding=(3-1)*2=4), eval mode.
    B, Cin, Cout, L = 2, 8, 16, 256
    K, dilation = 3, 2
    padding = (K - 1) * dilation

    key = jax.random.PRNGKey(0)
    kx, kp = jax.random.split(key)
    x_ncl = jax.random.normal(kx, (B, Cin, L), jnp.float32)     # PyTorch NCL input

    w1, b1, w2, b2, wd, bd = make_params(kp, Cin, Cout, K)

    out = temporal_block_pallas(x_ncl, w1, b1, w2, b2, wd, bd,
                                kernel_size=K, dilation=dilation)
    out = jax.block_until_ready(out)
    assert out.shape == (B, Cout, L)

    # Reference (f32 lax convs) on bf16-rounded inputs/weights, since the
    # kernel computes in bf16 with f32 accumulation.
    rd = lambda a: a.astype(jnp.bfloat16).astype(jnp.float32)
    ref = reference_forward(rd(x_ncl), rd(w1), b1, rd(w2), b2, rd(wd), bd,
                            dilation, padding)
    err = float(jnp.max(jnp.abs(out - ref)))
    assert jnp.allclose(out, ref, atol=3e-3, rtol=3e-2), f"mismatch vs reference (max abs err={err})"

    print("KERNEL_OK")
</pallas_src>

<mosaic_0001>
module attributes {stable_mosaic.version = 11 : i64} {
  func.func @_temporal_block_kernel(%arg0: i32, %arg1: memref<1x8x260xbf16, #tpu.memory_space<vmem>>, %arg2: memref<32x24xbf16, #tpu.memory_space<vmem>>, %arg3: memref<32x1xf32, #tpu.memory_space<vmem>>, %arg4: memref<16x48xbf16, #tpu.memory_space<vmem>>, %arg5: memref<16x1xf32, #tpu.memory_space<vmem>>, %arg6: memref<1x16x256xf32, #tpu.memory_space<vmem>>) attributes {dimension_semantics = [#tpu.dimension_semantics<parallel>], iteration_bounds = array<i64: 2>, scalar_prefetch = 0 : i64, scratch_operands = 0 : i64, tpu.core_type = #tpu.core_type<tc>, window_params = [{transform_indices = @transform_0, window_bounds = array<i64: 1, 8, 260>}, {pipeline_mode = #tpu.pipeline_mode<synchronous>, transform_indices = @transform_1, window_bounds = array<i64: 32, 24>}, {pipeline_mode = #tpu.pipeline_mode<synchronous>, transform_indices = @transform_2, window_bounds = array<i64: 32, 1>}, {pipeline_mode = #tpu.pipeline_mode<synchronous>, transform_indices = @transform_3, window_bounds = array<i64: 16, 48>}, {pipeline_mode = #tpu.pipeline_mode<synchronous>, transform_indices = @transform_4, window_bounds = array<i64: 16, 1>}, {transform_indices = @transform_5, window_bounds = array<i64: 1, 16, 256>}]} {
    %c0 = arith.constant 0 : index
    %c0_0 = arith.constant 0 : index
    %c0_1 = arith.constant 0 : index
    %0 = vector.load %arg1[%c0, %c0_0, %c0_1] : memref<1x8x260xbf16, #tpu.memory_space<vmem>>, vector<1x8x260xbf16>
    %1 = vector.shape_cast %0 : vector<1x8x260xbf16> to vector<8x260xbf16>
    %2 = vector.extract_strided_slice %1 {offsets = [0, 0], sizes = [8, 256], strides = [1, 1]} : vector<8x260xbf16> to vector<8x256xbf16>
    %3 = vector.extract_strided_slice %1 {offsets = [0, 2], sizes = [8, 256], strides = [1, 1]} : vector<8x260xbf16> to vector<8x256xbf16>
    %4 = vector.extract_strided_slice %1 {offsets = [0, 4], sizes = [8, 256], strides = [1, 1]} : vector<8x260xbf16> to vector<8x256xbf16>
    %5 = tpu.concatenate %2, %3, %4 in 0 : vector<8x256xbf16>, vector<8x256xbf16>, vector<8x256xbf16> -> vector<24x256xbf16>
    %c0_2 = arith.constant 0 : index
    %c0_3 = arith.constant 0 : index
    %6 = vector.load %arg2[%c0_2, %c0_3] : memref<32x24xbf16, #tpu.memory_space<vmem>>, vector<32x24xbf16>
    %cst = arith.constant dense<0.000000e+00> : vector<32x256xf32>
    %7 = tpu.matmul %6, %5, %cst {dimension_numbers = #tpu.dot_dimension_numbers<[1], [0], [0], [1], [0, 0, 1, 1], [], []>} : vector<32x24xbf16>, vector<24x256xbf16>, vector<32x256xf32> -> vector<32x256xf32>
    %c0_4 = arith.constant 0 : index
    %c0_5 = arith.constant 0 : index
    %8 = vector.load %arg3[%c0_4, %c0_5] : memref<32x1xf32, #tpu.memory_space<vmem>>, vector<32x1xf32>
    %9 = vector.broadcast %8 : vector<32x1xf32> to vector<32x256xf32>
    %10 = arith.addf %7, %9 : vector<32x256xf32>
    %11 = vector.extract_strided_slice %10 {offsets = [0, 0], sizes = [16, 256], strides = [1, 1]} : vector<32x256xf32> to vector<16x256xf32>
    %cst_6 = arith.constant 0.000000e+00 : f32
    %12 = vector.broadcast %cst_6 : f32 to vector<16x256xf32>
    %13 = arith.maximumf %11, %12 : vector<16x256xf32>
    %14 = vector.extract_strided_slice %10 {offsets = [16, 0], sizes = [16, 256], strides = [1, 1]} : vector<32x256xf32> to vector<16x256xf32>
    %15 = arith.truncf %13 : vector<16x256xf32> to vector<16x256xbf16>
    %cst_7 = arith.constant 0.000000e+00 : bf16
    %16 = vector.broadcast %cst_7 : bf16 to vector<16x4xbf16>
    %17 = tpu.concatenate %16, %15 in 1 : vector<16x4xbf16>, vector<16x256xbf16> -> vector<16x260xbf16>
    %18 = vector.extract_strided_slice %17 {offsets = [0, 0], sizes = [16, 256], strides = [1, 1]} : vector<16x260xbf16> to vector<16x256xbf16>
    %19 = vector.extract_strided_slice %17 {offsets = [0, 2], sizes = [16, 256], strides = [1, 1]} : vector<16x260xbf16> to vector<16x256xbf16>
    %20 = vector.extract_strided_slice %17 {offsets = [0, 4], sizes = [16, 256], strides = [1, 1]} : vector<16x260xbf16> to vector<16x256xbf16>
    %21 = tpu.concatenate %18, %19, %20 in 0 : vector<16x256xbf16>, vector<16x256xbf16>, vector<16x256xbf16> -> vector<48x256xbf16>
    %c0_8 = arith.constant 0 : index
    %c0_9 = arith.constant 0 : index
    %22 = vector.load %arg4[%c0_8, %c0_9] : memref<16x48xbf16, #tpu.memory_space<vmem>>, vector<16x48xbf16>
    %cst_10 = arith.constant dense<0.000000e+00> : vector<16x256xf32>
    %23 = tpu.matmul %22, %21, %cst_10 {dimension_numbers = #tpu.dot_dimension_numbers<[1], [0], [0], [1], [0, 0, 1, 1], [], []>} : vector<16x48xbf16>, vector<48x256xbf16>, vector<16x256xf32> -> vector<16x256xf32>
    %c0_11 = arith.constant 0 : index
    %c0_12 = arith.constant 0 : index
    %24 = vector.load %arg5[%c0_11, %c0_12] : memref<16x1xf32, #tpu.memory_space<vmem>>, vector<16x1xf32>
    %25 = vector.broadcast %24 : vector<16x1xf32> to vector<16x256xf32>
    %26 = arith.addf %23, %25 : vector<16x256xf32>
    %cst_13 = arith.constant 0.000000e+00 : f32
    %27 = vector.broadcast %cst_13 : f32 to vector<16x256xf32>
    %28 = arith.maximumf %26, %27 : vector<16x256xf32>
    %29 = arith.addf %28, %14 : vector<16x256xf32>
    %cst_14 = arith.constant 0.000000e+00 : f32
    %30 = vector.broadcast %cst_14 : f32 to vector<16x256xf32>
    %31 = arith.maximumf %29, %30 : vector<16x256xf32>
    %c0_15 = arith.constant 0 : index
    %c0_16 = arith.constant 0 : index
    %c0_17 = arith.constant 0 : index
    %32 = vector.load %arg6[%c0_15, %c0_16, %c0_17] : memref<1x16x256xf32, #tpu.memory_space<vmem>>, vector<1x16x256xf32>
    %33 = vector.shape_cast %32 : vector<1x16x256xf32> to vector<16x256xf32>
    %34 = vector.shape_cast %31 : vector<16x256xf32> to vector<1x16x256xf32>
    tpu.vector_store %arg6[%c0_15, %c0_16, %c0_17], %34 {strides = array<i32>} : memref<1x16x256xf32, #tpu.memory_space<vmem>>, vector<1x16x256xf32>,
    return
  }
  func.func @transform_0(%arg0: i32) -> (i32, i32, i32) {
    %c0_i32 = arith.constant 0 : i32
    %c0_i32_0 = arith.constant 0 : i32
    %c0_i32_1 = arith.constant 0 : i32
    return %arg0, %c0_i32, %c0_i32_0 : i32, i32, i32
  }
  func.func @transform_1(%arg0: i32) -> (i32, i32) {
    %c0_i32 = arith.constant 0 : i32
    %c0_i32_0 = arith.constant 0 : i32
    %c0_i32_1 = arith.constant 0 : i32
    return %c0_i32, %c0_i32_0 : i32, i32
  }
  func.func @transform_2(%arg0: i32) -> (i32, i32) {
    %c0_i32 = arith.constant 0 : i32
    %c0_i32_0 = arith.constant 0 : i32
    %c0_i32_1 = arith.constant 0 : i32
    return %c0_i32, %c0_i32_0 : i32, i32
  }
  func.func @transform_3(%arg0: i32) -> (i32, i32) {
    %c0_i32 = arith.constant 0 : i32
    %c0_i32_0 = arith.constant 0 : i32
    %c0_i32_1 = arith.constant 0 : i32
    return %c0_i32, %c0_i32_0 : i32, i32
  }
  func.func @transform_4(%arg0: i32) -> (i32, i32) {
    %c0_i32 = arith.constant 0 : i32
    %c0_i32_0 = arith.constant 0 : i32
    %c0_i32_1 = arith.constant 0 : i32
    return %c0_i32, %c0_i32_0 : i32, i32
  }
  func.func @transform_5(%arg0: i32) -> (i32, i32, i32) {
    %c0_i32 = arith.constant 0 : i32
    %c0_i32_0 = arith.constant 0 : i32
    %c0_i32_1 = arith.constant 0 : i32
    return %arg0, %c0_i32, %c0_i32_0 : i32, i32, i32
  }
}

</mosaic_0001>

<bundles_post_ra>
// kernel: tpu_custom_call.1
= control target key start
LH: loop header
LB: loop body
LE: loop exit
PB: predicated region body
PF: predicated region fallthrough
CT: control target
= control target key end

     0   :  { %10 = vsyncpa [#allocation3], 0  ;;  %s897_s0 = inlined_call_operand.vmem [shape: bf16[2,8,260], index: 0, kind: input, shape index: {}]   ;;  %s898_s1 = inlined_call_operand.vmem [shape: bf16[32,24], index: 1, kind: input, shape index: {}]   ;;  %s899_s2 = inlined_call_operand.vmem [shape: f32[32,1], index: 2, kind: input, shape index: {}]   ;;  %s900_s3 = inlined_call_operand.vmem [shape: bf16[16,48], index: 3, kind: input, shape index: {}]   ;;  %s901_s4 = inlined_call_operand.vmem [shape: f32[16,1], index: 4, kind: input, shape index: {}]   ;;  %s902_s5 = inlined_call_operand.hbm [shape: f32[2,16,256], index: 5, kind: output, shape index: {}]  }
   0x1   :  { %12 = vsyncpa [#allocation3 + $0x1], 0  ;;  %s741_s18 = smov 0   ;;  %s743_s19 = smov 0  }
   0x2   :  { %s745_s20 = smov 0   ;;  %s747_s21 = smov 0  }
   0x3 LB: > { %s762_s22 = sadd.s32 4294967295, %s702_s21   ;;  %s564_s23 = sadd.s32 4294967294, %s702_s21   ;;  %s702_s21 = sphi %s747_s21, %s908_s21   ;;  %s698_s20 = sphi %s745_s20, %s907_s20   ;;  %s694_s19 = sphi %s743_s19, %s906_s19   ;;  %s690_s18 = sphi %s741_s18, %s905_s18  }
   0x4   : > { %s766_s24 = sadd.s32 1, %s702_s21   ;;  %s135_s25 = sadd.s32 1, %s698_s20 }
   0x5   : > { %s132_s26 = ssub.s32 %s702_s21, %s766_s24  ;;  %p145_p0 = scmp.ne.s32.totalorder %s698_s20, %s694_s19 }
   0x6   : > { %p133_p1 = scmp.eq.s32.totalorder %s132_s26, 0  ;;  %p146_p2 = scmp.eq.s32.totalorder %s762_s22, 1 }
   0x7   : > { %p151_p3 = scmp.ne.s32.totalorder %s694_s19, %s690_s18  ;;  %p152_p4 = scmp.eq.s32.totalorder %s564_s23, 1 }
   0x8   : > { %s777_s27 = scalar_select %p133_p1, %s698_s20, %s135_s25  }
   0x9   : > { %p779_p5 = por %p146_p2, %p145_p0  ;;  %p783_p6 = por %p152_p4, %p151_p3 }
   0xa   : > { %p567_p7 = scmp.ge.s32.totalorder %s702_s21, 1  ;;  %p190_p8 = scmp.lt.s32.totalorder %s702_s21, 3 }
   0xc   : > { %p191_p9 = pnand %p567_p7, %p190_p8 }
   0xd   : > { %p218_p10 = scmp.lt.s32.totalorder (!%p191_p9), %s762_s22, 1  ;;  %s704_s10 = smov (!%p191_p9), 124  }
   0xe   : > { %194 = sbr.rel (%p191_p9) target bundleno = 828 (0x33c), region = 40  ;;  %s706_s11 = smov (!%p191_p9), 126  }
   0xf   : > { %s707_s26 = smov (!%p191_p9), 4   ;;  %s215_s15 = sand.u32 (!%p191_p9), 1, %s694_s19  }
  0x10   : > { %s568_s16 = sshll.u32 (!%p191_p9), %s215_s15, 5  ;;  %s587_s25 = sshll.u32 (!%p191_p9), %s762_s22, 9 }
  0x11   : > { %s217_s17 = scalar_lea.vmem (!%p191_p9), [#allocation2], %s568_s16  ;;  %s857_s7 = scalar_lea.sflag (!%p191_p9), [#allocation3], %s215_s15 }
  0x12   : > { %s502_s23 = sshll.u32 (!%p191_p9), %s217_s17, 4  ;;  %s708_s8 = smov (!%p191_p9), [#allocation2]   ;;  %s848_s23 = int_to_ptr.vmem [resolvable:$true] %s502_s23 }
  0x13   : > { %s219_s30 = scalar_select %p218_p10, %s762_s22, 1  ;;  %v705_v4 = vmov 0   ;;  %v266_v5 = vld [vmem:[%s899_s2 + $0x8] sm:$0xff]  ;;  %v265_v6 = vld [vmem:[%s899_s2] sm:$0xff]  ;;  %vm249_vm0 = vcmask 1014784   ;;  %vm252_vm1 = vcmask 1043456  }
  0x14   : > { %344 = vmatprep.mubr.bf16.mxu0 %v705_v4  ;;  %635 = vset.pattern.permute.xlu1 %v705_v4  ;;  %vm240_vm2 = vcmask 1031168   ;;  %v639_v20 = vld [vmem:[%s898_s1] sm:$0xff]   ;;  %vm299_vm3 = vcmask 195584   ;;  %v640_v21 = vld [vmem:[%s898_s1 + $0x8] sm:$0xff]   ;;  %vm377_vm4 = vcmask 31744   ;;  %v267_v44 = vld [vmem:[%s899_s2 + $0x10] sm:$0xff] }
  0x15   : > { %s588_s6 = smul.u32 12, %s219_s30  ;;  %634 = vset.pattern.permute.xlu0 %v705_v4  ;;  %461 = vmatprep.mubr.bf16.mxu1 %v705_v4  ;;  %v408_v42 = vld [vmem:[%s901_s4] sm:$0xff]  ;;  %v409_v43 = vld [vmem:[%s901_s4 + $0x8] sm:$0xff]  ;;  %v268_v45 = vld [vmem:[%s899_s2 + $0x18] sm:$0xff]  ;;  %vm425_vm6 = vcmask 392192   ;;  %s642_s22 = scalar_lea.vmem %s848_s23, 512 }
  0x16   : > { %vm579_vm5 = vmneg %vm377_vm4  ;;  %v641_v56 = vld [vmem:[%s900_s3] sm:$0xff]   ;;  %p643_p11 = scmp.ne.s32.totalorder %s848_s23, %s642_s22 }
  0x17   : > { %s222_s9 = scalar_lea.vmem %s897_s0, %s588_s6  ;;  %s853_s6 = scalar_lea.hbm %s902_s5, %s587_s25 }
  0x18   : > { %v636_v0 = vld [vmem:[%s222_s9 + $0x8] ss:$0 sps:$4 sm:$0xff]   ;;  %v224_v1 = vld [vmem:[%s222_s9] sm:$0xff]  ;;  %p644_p12 = pnand %p643_p11, %p779_p5  ;;  %s646_s9 = sshll.u32 %s708_s8, 4  ;;  %s647_s9 = int_to_ptr.vmem [resolvable:$false] %s646_s9 }
  0x19   : > { %v570_v2 = vcombine.low %v224_v1, %v224_v1  ;;  %247 = vrot.lane.b32.xlu1 %v636_v0, %s704_s10  ;;  %v571_v3 = vcombine.high %v224_v1, %v224_v1  ;;  %s648_s12 = scalar_lea.vmem %s647_s9, 1024  ;;  %p649_p0 = scmp.lt.s32.totalorder %s848_s23, %s647_s9 }
  0x1a   : > { %p645_p13 = pneg %p644_p12  ;;  %p650_p1 = scmp.lt.s32.totalorder %s648_s12, %s642_s22 }
  0x1b   : > { %243 = vrot.lane.b32.xlu0 %v570_v2, %s704_s10 }
  0x1c   : > { %p651_p2 = por %p650_p1, %p649_p0 }
  0x1d   : > { %236 = vrot.lane.b32.xlu1 %v571_v3, %s706_s11 }
  0x1e   : > { %p652_p3 = pnand %p651_p2, %p645_p13 }
  0x1f   : > { %245 = vrot.lane.b32.xlu0 %v571_v3, %s704_s10 }
  0x21   : > { %234 = vrot.lane.b32.xlu1 %v570_v2, %s706_s11 }
  0x23   : > { %238 = vrot.lane.b32.xlu0 %v636_v0, %s706_s11 }
  0x25   : > { %276 = vperm.xlu1 %635, %v266_v5  }
  0x27   : > { %271 = vperm.xlu0 %634, %v265_v6  }
  0x8b   : > { %v248_v7 = vpop.permute.xlu1 %247 }
  0x8d   : > { %v244_v8 = vpop.permute.xlu0 %243 }
  0x8f   : > { %v237_v9 = vpop.permute.xlu1 %236 }
  0x91   : > { %v246_v10 = vpop.permute.xlu0 %245 }
  0x92   : > { %v251_v11 = vsel %vm249_vm0, %v246_v10, %v248_v7  ;;  %v250_v12 = vsel %vm249_vm0, %v244_v8, %v246_v10 }
  0x93   : > { %575 = vmatprep.subr.msk.bf16.mxu0 %vm252_vm1, %v251_v11  ;;  %v307_v13 = vsel %vm252_vm1, %v250_v12, 0  ;;  %v235_v14 = vpop.permute.xlu1 %234 }
  0x94   : > { %325 = vmatpush1.bf16.msra.mxu0 %v307_v13  ;;  %v241_v15 = vsel %vm240_vm2, %v235_v14, %v237_v9 }
  0x95   : > { %v239_v16 = vpop.permute.xlu0 %238  ;;  %v255_v19 = vsel %vm252_vm1, %v570_v2, %v241_v15 }
  0x96   : > { %v242_v17 = vsel %vm240_vm2, %v237_v9, %v239_v16 }
  0x97   : > { %v259_v18 = vsel %vm252_vm1, %v571_v3, %v242_v17 }
  0x98   : > { %326 = vmatprep.subr.bf16.mxu0 %v259_v18 }
  0x99   : > { %327 = vmatpush1.bf16.msra.mxu0 %v255_v19 }
  0x9c   : > { %576 = vmatmul.mubr.msk.bf16.vlgmr.msra.gmra.mxu0 %vm299_vm3, %v639_v20 }
  0x9d   : > { %354 = vmatprep.mubr.bf16.mxu0 %v705_v4 }
  0xa0   : > { %v277_v25 = vpop.permute.xlu1 %276 }
  0xa2   : > { %v272_v23 = vpop.permute.xlu0 %271 }
  0xa4   : > { %577 = vmatmul.mubr.msk.bf16.gmra.mxu0 %vm299_vm3, %v640_v21 }
 0x15c   : > { %v346_v22 = vpop.f32.mrf.mxu0 }
 0x15d   : > { %v347_v26 = vadd.f32 %v346_v22, %v272_v23 }
 0x15e   : > { %v348_v24 = vpop.f32.mrf.mxu0 }
 0x15f   : > { %v349_v28 = vadd.f32 %v348_v24, %v272_v23  ;;  %v365_v31 = vmax.f32 %v347_v26, 0.0 }
 0x160   : > { %v350_v27 = vpop.f32.mrf.mxu0 }
 0x161   : > { %v351_v29 = vadd.f32 %v350_v27, %v277_v25  ;;  %v366_v34 = vmax.f32 %v349_v28, 0.0 }
 0x162   : > { %v352_v30 = vpop.f32.mrf.mxu0 }
 0x163   : > { %v367_v32 = vmax.f32 %v351_v29, 0.0  ;;  %v353_v33 = vadd.f32 %v352_v30, %v277_v25 }
 0x164   : > { %v356_v57 = vpop.f32.mrf.mxu0 }
 0x165   : > { %v369_v35 = vpack.c.bf16 %v367_v32, %v365_v31  ;;  %v368_v36 = vmax.f32 %v353_v33, 0.0 }
 0x166   : > { %v358_v60 = vpop.f32.mrf.mxu0 }
 0x167   : > { %v370_v37 = vpack.c.bf16 %v368_v36, %v366_v34  ;;  %373 = vrot.lane.b32.xlu1 %v369_v35, %s707_s26 }
 0x168   : > { %v360_v0 = vpop.f32.mrf.mxu0 }
 0x169   : > { %375 = vrot.lane.b32.xlu0 %v370_v37, %s707_s26 }
 0x16a   : > { %v362_v11 = vpop.f32.mrf.mxu0 }
 0x1d9   : > { %v374_v38 = vpop.permute.xlu1 %373 }
 0x1da   : > { %v383_v39 = vsel %vm377_vm4, 0, %v374_v38 }
 0x1db   : > { %v376_v40 = vpop.permute.xlu0 %375  ;;  %396 = vrot.lane.b32.xlu1 %v383_v39, %s704_s10 }
 0x1dc   : > { %400 = vrot.lane.b32.xlu0 %v376_v40, %s704_s10  ;;  %v378_v41 = vsel %vm377_vm4, %v374_v38, %v376_v40 }
 0x1df   : > { %398 = vrot.lane.b32.xlu1 %v378_v41, %s704_s10 }
 0x1e0   : > { %388 = vrot.lane.b32.xlu0 %v378_v41, %s706_s11 }
 0x1e3   : > { %390 = vrot.lane.b32.xlu1 %v376_v40, %s706_s11 }
 0x1e4   : > { %386 = vrot.lane.b32.xlu0 %v383_v39, %s706_s11 }
 0x1e7   : > { %412 = vperm.xlu1 %635, %v408_v42  }
 0x1e8   : > { %417 = vperm.xlu0 %634, %v409_v43  }
 0x1eb   : > { %281 = vperm.xlu1 %635, %v267_v44  }
 0x1ec   : > { %286 = vperm.xlu0 %634, %v268_v45  }
 0x24d   : > { %v397_v46 = vpop.permute.xlu1 %396 }
 0x24e   : > { %v401_v47 = vpop.permute.xlu0 %400 }
 0x251   : > { %v399_v48 = vpop.permute.xlu1 %398 }
 0x252   : > { %v389_v49 = vpop.permute.xlu0 %388  ;;  %v403_v50 = vsel %vm249_vm0, %v399_v48, %v401_v47  ;;  %v402_v51 = vsel %vm249_vm0, %v397_v46, %v399_v48 }
 0x253   : > { %439 = vmatprep.subr.bf16.mxu1 %v403_v50 }
 0x254   : > { %440 = vmatpush1.bf16.msra.mxu1 %v402_v51 }
 0x255   : > { %v391_v52 = vpop.permute.xlu1 %390 }
 0x256   : > { %v387_v53 = vpop.permute.xlu0 %386  ;;  %v393_v54 = vsel %vm240_vm2, %v389_v49, %v391_v52 }
 0x257   : > { %441 = vmatprep.subr.bf16.mxu1 %v393_v54  ;;  %v392_v55 = vsel %vm240_vm2, %v387_v53, %v389_v49 }
 0x258   : > { %442 = vmatpush1.bf16.msra.mxu1 %v392_v55 }
 0x259   : > { %443 = vmatprep.subr.bf16.mxu1 %v378_v41 }
 0x25c   : > { %580 = vmatpush1.bf16.msk.msra.mxu1 %vm579_vm5, %v374_v38 }
 0x25f   : > { %581 = vmatmul.mubr.msk.bf16.vlgmr.msra.gmra.mxu1 %vm425_vm6, %v641_v56 }
 0x262   : > { %v413_v58 = vpop.permute.xlu1 %412 }
 0x263   : > { %v418_v59 = vpop.permute.xlu0 %417 }
 0x266   : > { %v282_v61 = vpop.permute.xlu1 %281 }
 0x267   : > { %v357_v2 = vadd.f32 %v356_v57, %v282_v61  ;;  %v287_v3 = vpop.permute.xlu0 %286  ;;  %v359_v7 = vadd.f32 %v358_v60, %v282_v61 }
 0x268   : > { %v361_v12 = vadd.f32 %v360_v0, %v287_v3  ;;  %v363_v18 = vadd.f32 %v362_v11, %v287_v3 }
 0x31f   : > { %v463_v62 = vpop.f32.mrf.mxu1 }
 0x320   : > { %v464_v63 = vadd.f32 %v463_v62, %v413_v58 }
 0x321   : > { %v465_v1 = vpop.f32.mrf.mxu1 }
 0x322   : > { %v472_v4 = vmax.f32 %v464_v63, 0.0  ;;  %v466_v5 = vadd.f32 %v465_v1, %v413_v58 }
 0x323   : > { %v467_v6 = vpop.f32.mrf.mxu1 }
 0x324   : > { %v476_v8 = vadd.f32 %v472_v4, %v357_v2  ;;  %v473_v9 = vmax.f32 %v466_v5, 0.0  ;;  %v468_v10 = vadd.f32 %v467_v6, %v418_v59 }
 0x325   : > { %v469_v13 = vpop.f32.mrf.mxu1 }
 0x326   : > { %v480_v14 = vmax.f32 %v476_v8, 0.0  ;;  %v477_v15 = vadd.f32 %v473_v9, %v359_v7  ;;  %v474_v16 = vmax.f32 %v468_v10, 0.0  ;;  %v470_v17 = vadd.f32 %v469_v13, %v418_v59 }
 0x328   : > { %484 = vst [vmem:[%s217_s17] sm:$0xff] %v480_v14  ;;  %v481_v19 = vmax.f32 %v477_v15, 0.0  ;;  %v478_v20 = vadd.f32 %v474_v16, %v361_v12  ;;  %v475_v21 = vmax.f32 %v470_v17, 0.0 }
 0x32a   : > { %485 = vst [vmem:[%s217_s17 + $0x8] sm:$0xff] %v481_v19  ;;  %v482_v22 = vmax.f32 %v478_v20, 0.0  ;;  %v479_v23 = vadd.f32 %v475_v21, %v363_v18 }
 0x32c   : > { %486 = vst [vmem:[%s217_s17 + $0x10] sm:$0xff] %v482_v22  ;;  %v483_v24 = vmax.f32 %v479_v23, 0.0 }
 0x32e   : > { %487 = vst [vmem:[%s217_s17 + $0x18] sm:$0xff] %v483_v24 }
 0x32f   : > { %655 = shalt.err (!%p652_p3)
}
 0x330   : > { %s656_s10 = scalar_lea.hbm %s853_s6, 512  ;;  %s660_s14 = scalar_lea.hbm %s902_s5, 1024 }
 0x331   : > { %p657_p4 = scmp.ne.s32.totalorder %s853_s6, %s656_s10  ;;  %p661_p9 = scmp.lt.s32.totalorder %s853_s6, %s902_s5 }
 0x332   : > { %p662_p10 = scmp.lt.s32.totalorder %s660_s14, %s656_s10 }
 0x333   : > { %p658_p7 = pnand %p657_p4, %p779_p5 }
 0x334   : > { %p663_p11 = por %p662_p10, %p661_p9 }
 0x335   : > { %p659_p8 = pneg %p658_p7 }
 0x337   : > { %p664_p12 = pnand %p663_p11, %p659_p8 }
 0x339   : > { %667 = shalt.err (!%p664_p12)
}
 0x33a   : > { %s709_s17 = smov 256   ;;  %s710_s25 = smov 16  }
 0x33b   : > { %589 = dma.vmem_to_hbm [thread:$0]  (%p779_p5), %s848_s23, 512, %s853_s6, %s857_s7, %s709_s17, %s709_s17, %s710_s25  }
 0x33c PF: > { %p595_p13 = scmp.ge.s32.totalorder %s702_s21, 2  ;;  %s517_s26 = sand.u32 1, %s690_s18  }
 0x33d   : > { %s518_s30 = scalar_lea.sflag [#allocation3], %s517_s26 }
 0x33e   : > { %p592_p0 = pnand %p595_p13, %p783_p6 }
 0x340   : > { %p593_p1 = pneg %p592_p0 }
 0x342   : > { %685 = dma.done.wait (%p593_p1), %s518_s30, 512  }
 0x343   : > { %687 = vsyncadd (%p593_p1), %s518_s30, 4294966784  ;;  %p15_p2 = scmp.ge.s32.totalorder %s766_s24, 4   ;;  %s905_s18 = smov %s694_s19 }
 0x344   : > { %s906_s19 = smov %s698_s20  ;;  %s907_s20 = smov %s777_s27 }
 0x345   : > { %s908_s21 = smov %s766_s24  ;;  %17 = sbr.rel (!%p15_p2) target bundleno = 3 (0x3), region = 75 }
 0x34a   :  { %523 = vsyncpa [#allocation3], 1 }
 0x34b   :  { %525 = vsyncpa [#allocation3 + $0x1], 1 }

</bundles_post_ra>
